<compile_context>
chip_gen: v7x
topology: tpu7x:2x2x1
jax: 0.10.0
libtpu: 0.0.40
codegen_flags: <defaults>
</compile_context>

<pallas_src>
import numpy as np
import jax
import jax.numpy as jnp
from jax import lax
from jax.experimental import pallas as pl
from jax.experimental.pallas import tpu as pltpu

# Fixed 'd1' high-pass filters (PyTorch conv2d == cross-correlation):
#   f0: x[r+1, c  ] - x[r, c]   ("down"  - center)
#   f1: x[r  , c+1] - x[r, c]   ("right" - center)
#   f2: x[r+1, c+1] - x[r, c]   ("diag"  - center)
FILTERS_D1 = [
    np.array([[0.0, 0.0, 0.0], [0.0, -1.0, 0.0], [0.0, 1.0, 0.0]]),
    np.array([[0.0, 0.0, 0.0], [0.0, -1.0, 1.0], [0.0, 0.0, 0.0]]),
    np.array([[0.0, 0.0, 0.0], [0.0, -1.0, 0.0], [0.0, 0.0, 1.0]]),
]

KSIZE = 3
CIN = 3                 # in_channels = groups = 3
NBANKS = 3              # conv2d_1 / conv2d_2 / conv2d_3
COUT = NBANKS * CIN     # 9


def _round_up(x, m):
    return ((x + m - 1) // m) * m


def _make_kernel(W, has_halo):
    """Kernel over one (NB, CIN, HT*W) lane-flattened row tile."""

    def kernel(*refs):
        if has_halo:
            b_ref, x_ref, halo_ref, o_ref = refs
        else:
            b_ref, x_ref, o_ref = refs
            halo_ref = None

        x = x_ref[...]                                   # (NB, CIN, LT), fp32
        nb, _, lt = x.shape

        # Next-row halo (first row of the next row-tile), or zeros for the
        # bottom of the image.  Use a select (not a multiply) so Inf/NaN in the
        # clamped last-tile fetch cannot leak into the outputs.
        if has_halo:
            t = pl.program_id(1)
            interior = (t + 1) < pl.num_programs(1)
            h = halo_ref[:, :, 0, :]                     # (NB, CIN, W)
            h = jnp.where(interior, h, jnp.zeros_like(h))
        else:
            h = jnp.zeros((nb, CIN, W), jnp.float32)

        # x shifted down by one image row (rows are flattened into the lane
        # axis, so "one row down" is a W-lane shift; the tile's last row comes
        # from the halo / zeros).
        down = jnp.concatenate([x[:, :, W:], h], axis=-1)

        # Column-within-row mask: right/diag taps must not wrap across rows.
        col = lax.broadcasted_iota(jnp.int32, (1, 1, lt), 2) % W
        not_last_col = col < (W - 1)

        def shift_left1(v):                              # v[r, c+1] (unmasked)
            return jnp.concatenate(
                [v[:, :, 1:], jnp.zeros_like(v[:, :, :1])], axis=-1)

        right = jnp.where(not_last_col, shift_left1(x), 0.0)     # x[r, c+1]
        diag = jnp.where(not_last_col, shift_left1(down), 0.0)   # x[r+1, c+1]

        b = b_ref[...]                                   # (NBANKS, CIN, 1)
        y0 = down - x + b[0][jnp.newaxis]
        y1 = right - x + b[1][jnp.newaxis]
        y2 = diag - x + b[2][jnp.newaxis]

        if o_ref.dtype == jnp.float32:
            # Per-bank sublane-range stores (dense along lanes).
            o_ref[:, 0 * CIN:1 * CIN, :] = y0
            o_ref[:, 1 * CIN:2 * CIN, :] = y1
            o_ref[:, 2 * CIN:3 * CIN, :] = y2
        else:
            # For packed output dtypes (bf16), write the whole block once to
            # avoid sub-sublane masked stores on packed rows.
            o_ref[...] = jnp.concatenate([y0, y1, y2], axis=1).astype(o_ref.dtype)

    return kernel


def _block_bytes(nb, ht, H, W, out_bytes):
    """Real per-step VMEM for the pipelined blocks: sublane padding (3->8,
    9->16, halo lane pad to 128) and 2x double buffering included."""
    lt = ht * W
    in_b = nb * 8 * lt * 4                                   # (NB, 3->8, LT) fp32
    out_b = nb * 16 * lt * out_bytes                         # (NB, 9->16, LT)
    halo_b = (nb * CIN * 8 * _round_up(W, 128) * 4) if ht < H else 0
    bias_b = NBANKS * 8 * 128 * 4
    return 2 * (in_b + out_b + halo_b + bias_b)


def _choose_tiling(N, H, W, budget_bytes, out_bytes, min_steps=8):
    """Pick (images per step, rows per step): fit the VMEM budget, then prefer
    >= min_steps total grid steps and an even step count (v7x megacore split),
    then the largest block (fewest steps / longest DMAs)."""
    hts = {H}
    for ht in range(8, H, 8):
        if H % ht == 0 and (ht * W) % 128 == 0:
            hts.add(ht)
    nbs = [nb for nb in range(1, N + 1) if N % nb == 0]

    best, best_key = None, None
    for nb in nbs:
        for ht in sorted(hts):
            bb = _block_bytes(nb, ht, H, W, out_bytes)
            if bb > budget_bytes:
                continue
            steps = (N // nb) * (H // ht)
            key = (min(steps, min_steps), steps % 2 == 0, bb, -steps)
            if best_key is None or key > best_key:
                best, best_key = (nb, ht), key
    if best is None:
        best = (1, min(hts))          # smallest expressible block; best effort
    return best


def high_pass_block(x, biases, *, block_batch=None, block_rows=None,
                    out_dtype=jnp.float32):
    """x: (N, 3, H, W) float32, biases: (NBANKS, CIN) -> (N, 9, H, W) out_dtype.

    out_dtype=jnp.bfloat16 halves the output HBM traffic (the kernel is
    HBM-bandwidth bound and the output write is 75% of total bytes); use it when
    the downstream backbone runs in bf16.
    """
    N, C, H, W = x.shape
    assert C == CIN
    x = x.astype(jnp.float32)
    b_vmem = jnp.asarray(biases, jnp.float32).reshape(NBANKS, CIN, 1)

    try:
        vmem_cap = int(pltpu.get_tpu_info().vmem_capacity_bytes)
    except Exception:
        vmem_cap = 64 * 1024 * 1024
    out_bytes = jnp.dtype(out_dtype).itemsize
    budget = int(vmem_cap * 0.45)                        # headroom for compiler temps
    vmem_limit = min(int(vmem_cap * 0.85), 100 * 1024 * 1024)

    nb_auto, ht_auto = _choose_tiling(N, H, W, budget, out_bytes)
    NB = block_batch if block_batch is not None else nb_auto
    HT = block_rows if block_rows is not None else ht_auto
    assert N % NB == 0 and H % HT == 0
    if HT < H:
        assert HT % 8 == 0 and (HT * W) % 128 == 0, "row tiling needs aligned tiles"

    blk = _block_bytes(NB, HT, H, W, out_bytes)
    if blk > int(vmem_cap * 0.75):
        raise ValueError(
            f"requested block needs ~{blk} B of VMEM (>75% of {vmem_cap} B); "
            f"use smaller block_batch/block_rows")

    n_row_tiles = H // HT
    has_halo = n_row_tiles > 1
    LT = HT * W

    # Free reshape: flatten H*W into the lane axis (lane-dense loads/stores).
    x_flat = x.reshape(N, CIN, H * W)
    grid = (N // NB, n_row_tiles)

    in_specs = [
        pl.BlockSpec((NBANKS, CIN, 1), lambda n, t: (0, 0, 0)),      # biases
        pl.BlockSpec((NB, CIN, LT), lambda n, t: (n, 0, t)),         # flattened tile
    ]
    args = [b_vmem, x_flat]
    if has_halo:
        hblk = HT // 8
        last_hblk = H // 8 - 1
        in_specs.append(
            pl.BlockSpec((NB, CIN, 8, W),
                         lambda n, t: (n, 0, jnp.minimum((t + 1) * hblk, last_hblk), 0)))
        args.append(x)                                               # halo rows (4-D view)

    out_flat = pl.pallas_call(
        _make_kernel(W, has_halo),
        out_shape=jax.ShapeDtypeStruct((N, COUT, H * W), out_dtype),
        grid=grid,
        in_specs=in_specs,
        out_specs=pl.BlockSpec((NB, COUT, LT), lambda n, t: (n, 0, t)),
        compiler_params=pltpu.CompilerParams(
            dimension_semantics=("parallel", "parallel"),
            vmem_limit_bytes=int(vmem_limit)),
    )(*args)

    return out_flat.reshape(N, COUT, H, W)


def reference(x, biases):
    """Pure-JAX reference: depthwise conv via feature_group_count."""
    outs = []
    for f in range(NBANKS):
        w = np.repeat(FILTERS_D1[f][np.newaxis, np.newaxis, :, :], CIN, axis=0)
        y = lax.conv_general_dilated(
            x, jnp.asarray(w, jnp.float32), window_strides=(1, 1),
            padding=((1, 1), (1, 1)), feature_group_count=CIN,
            dimension_numbers=("NCHW", "OIHW", "NCHW"))
        y = y + biases[f].reshape(1, CIN, 1, 1)
        outs.append(y)
    return jnp.concatenate(outs, axis=1)


if __name__ == "__main__":
    key = jax.random.PRNGKey(0)
    kx, kb = jax.random.split(key)

    N, H, W = 2, 16, 16
    x = jax.random.normal(kx, (N, CIN, H, W), dtype=jnp.float32)

    # nn.Conv2d default bias init: uniform(-1/sqrt(fan_in), 1/sqrt(fan_in)), fan_in = 9.
    bound = 1.0 / np.sqrt(KSIZE * KSIZE)
    biases = jax.random.uniform(kb, (NBANKS, CIN), jnp.float32, -bound, bound)

    ref = reference(x, biases)

    # Auto tiling: picks NB=1, HT=8 here -> grid (2, 2), exercises the halo path.
    out = jax.block_until_ready(high_pass_block(x, biases))
    np.testing.assert_allclose(np.asarray(out), np.asarray(ref), rtol=1e-5, atol=1e-5)

    # Forced single-tile path (no halo, whole batch per step).
    out_nt = jax.block_until_ready(
        high_pass_block(x, biases, block_batch=2, block_rows=16))
    np.testing.assert_allclose(np.asarray(out_nt), np.asarray(ref), rtol=1e-5, atol=1e-5)

    # bf16 output path (HBM-traffic optimization for bf16 backbones), tiled + halo.
    out_bf = jax.block_until_ready(
        high_pass_block(x, biases, block_batch=1, block_rows=8,
                        out_dtype=jnp.bfloat16))
    np.testing.assert_allclose(np.asarray(out_bf).astype(np.float32), np.asarray(ref),
                               rtol=2e-2, atol=5e-2)

    print("KERNEL_OK")
</pallas_src>

<mosaic_0001>
module attributes {stable_mosaic.version = 11 : i64} {
  func.func @kernel(%arg0: i32, %arg1: i32, %arg2: memref<3x3x1xf32, #tpu.memory_space<vmem>>, %arg3: memref<1x3x128xf32, #tpu.memory_space<vmem>>, %arg4: memref<1x3x8x16xf32, #tpu.memory_space<vmem>>, %arg5: memref<1x9x128xf32, #tpu.memory_space<vmem>>) attributes {dimension_semantics = [#tpu.dimension_semantics<parallel>, #tpu.dimension_semantics<parallel>], iteration_bounds = array<i64: 2, 2>, scalar_prefetch = 0 : i64, scratch_operands = 0 : i64, tpu.core_type = #tpu.core_type<tc>, window_params = [{pipeline_mode = #tpu.pipeline_mode<synchronous>, transform_indices = @transform_0, window_bounds = array<i64: 3, 3, 1>}, {transform_indices = @transform_1, window_bounds = array<i64: 1, 3, 128>}, {transform_indices = @transform_2, window_bounds = array<i64: 1, 3, 8, 16>}, {transform_indices = @transform_3, window_bounds = array<i64: 1, 9, 128>}]} {
    %c0 = arith.constant 0 : index
    %c0_0 = arith.constant 0 : index
    %c0_1 = arith.constant 0 : index
    %0 = vector.load %arg3[%c0, %c0_0, %c0_1] : memref<1x3x128xf32, #tpu.memory_space<vmem>>, vector<1x3x128xf32>
    %c1_i32 = arith.constant 1 : i32
    %1 = arith.addi %arg1, %c1_i32 : i32
    %c2_i32 = arith.constant 2 : i32
    %2 = arith.cmpi slt, %1, %c2_i32 : i32
    %c0_2 = arith.constant 0 : index
    %c0_3 = arith.constant 0 : index
    %c0_4 = arith.constant 0 : index
    %c0_5 = arith.constant 0 : index
    %3 = vector.load %arg4[%c0_2, %c0_3, %c0_4, %c0_5] : memref<1x3x8x16xf32, #tpu.memory_space<vmem>>, vector<1x3x1x16xf32>
    %4 = vector.shape_cast %3 : vector<1x3x1x16xf32> to vector<1x3x16xf32>
    %cst = arith.constant 0.000000e+00 : f32
    %5 = vector.broadcast %cst : f32 to vector<1x3x16xf32>
    %6 = arith.select %2, %4, %5 : vector<1x3x16xf32>
    %7 = vector.extract_strided_slice %0 {offsets = [0, 0, 16], sizes = [1, 3, 112], strides = [1, 1, 1]} : vector<1x3x128xf32> to vector<1x3x112xf32>
    %8 = tpu.concatenate %7, %6 in 2 : vector<1x3x112xf32>, vector<1x3x16xf32> -> vector<1x3x128xf32>
    %9 = tpu.iota {dimensions = array<i32: 2>} : vector<1x1x128xi32>
    %c16_i32 = arith.constant 16 : i32
    %c0_i32 = arith.constant 0 : i32
    %10 = arith.cmpi eq, %c16_i32, %c0_i32 : i32
    %c1_i32_6 = arith.constant 1 : i32
    %11 = arith.select %10, %c1_i32_6, %c16_i32 : i32
    %12 = vector.broadcast %11 : i32 to vector<1x1x128xi32>
    %13 = arith.remsi %9, %12 : vector<1x1x128xi32>
    %c0_i32_7 = arith.constant 0 : i32
    %14 = vector.broadcast %c0_i32_7 : i32 to vector<1x1x128xi32>
    %15 = arith.cmpi ne, %13, %14 : vector<1x1x128xi32>
    %c0_i32_8 = arith.constant 0 : i32
    %16 = vector.broadcast %c0_i32_8 : i32 to vector<1x1x128xi32>
    %17 = arith.cmpi slt, %13, %16 : vector<1x1x128xi32>
    %c0_i32_9 = arith.constant 0 : i32
    %18 = arith.cmpi slt, %11, %c0_i32_9 : i32
    %19 = vector.broadcast %18 : i1 to vector<1x1x128xi1>
    %20 = vector.broadcast %19 : vector<1x1x128xi1> to vector<1x1x128xi1>
    %21 = arith.xori %17, %20 : vector<1x1x128xi1>
    %22 = arith.andi %21, %15 : vector<1x1x128xi1>
    %23 = vector.broadcast %11 : i32 to vector<1x1x128xi32>
    %24 = arith.addi %13, %23 : vector<1x1x128xi32>
    %25 = arith.select %22, %24, %13 : vector<1x1x128xi1>, vector<1x1x128xi32>
    %c15_i32 = arith.constant 15 : i32
    %26 = vector.broadcast %c15_i32 : i32 to vector<1x1x128xi32>
    %27 = arith.cmpi slt, %25, %26 : vector<1x1x128xi32>
    %28 = vector.extract_strided_slice %0 {offsets = [0, 0, 1], sizes = [1, 3, 127], strides = [1, 1, 1]} : vector<1x3x128xf32> to vector<1x3x127xf32>
    %cst_10 = arith.constant 0.000000e+00 : f32
    %29 = vector.broadcast %cst_10 : f32 to vector<1x3x1xf32>
    %30 = tpu.concatenate %28, %29 in 2 : vector<1x3x127xf32>, vector<1x3x1xf32> -> vector<1x3x128xf32>
    %cst_11 = arith.constant 0.000000e+00 : f32
    %31 = vector.shape_cast %27 : vector<1x1x128xi1> to vector<1x1x128xi1>
    %32 = vector.broadcast %31 : vector<1x1x128xi1> to vector<1x3x128xi1>
    %33 = vector.broadcast %cst_11 : f32 to vector<1x3x128xf32>
    %34 = arith.select %32, %30, %33 : vector<1x3x128xi1>, vector<1x3x128xf32>
    %35 = vector.extract_strided_slice %8 {offsets = [0, 0, 1], sizes = [1, 3, 127], strides = [1, 1, 1]} : vector<1x3x128xf32> to vector<1x3x127xf32>
    %cst_12 = arith.constant 0.000000e+00 : f32
    %36 = vector.broadcast %cst_12 : f32 to vector<1x3x1xf32>
    %37 = tpu.concatenate %35, %36 in 2 : vector<1x3x127xf32>, vector<1x3x1xf32> -> vector<1x3x128xf32>
    %cst_13 = arith.constant 0.000000e+00 : f32
    %38 = vector.shape_cast %27 : vector<1x1x128xi1> to vector<1x1x128xi1>
    %39 = vector.broadcast %38 : vector<1x1x128xi1> to vector<1x3x128xi1>
    %40 = vector.broadcast %cst_13 : f32 to vector<1x3x128xf32>
    %41 = arith.select %39, %37, %40 : vector<1x3x128xi1>, vector<1x3x128xf32>
    %c0_14 = arith.constant 0 : index
    %c0_15 = arith.constant 0 : index
    %c0_16 = arith.constant 0 : index
    %42 = vector.load %arg2[%c0_14, %c0_15, %c0_16] : memref<3x3x1xf32, #tpu.memory_space<vmem>>, vector<3x3x1xf32>
    %43 = arith.subf %8, %0 : vector<1x3x128xf32>
    %44 = vector.extract_strided_slice %42 {offsets = [0, 0, 0], sizes = [1, 3, 1], strides = [1, 1, 1]} : vector<3x3x1xf32> to vector<1x3x1xf32>
    %45 = vector.shape_cast %44 : vector<1x3x1xf32> to vector<3x1xf32>
    %46 = vector.shape_cast %45 : vector<3x1xf32> to vector<1x3x1xf32>
    %47 = vector.broadcast %46 : vector<1x3x1xf32> to vector<1x3x128xf32>
    %48 = arith.addf %43, %47 : vector<1x3x128xf32>
    %49 = arith.subf %34, %0 : vector<1x3x128xf32>
    %50 = vector.extract_strided_slice %42 {offsets = [1, 0, 0], sizes = [1, 3, 1], strides = [1, 1, 1]} : vector<3x3x1xf32> to vector<1x3x1xf32>
    %51 = vector.shape_cast %50 : vector<1x3x1xf32> to vector<3x1xf32>
    %52 = vector.shape_cast %51 : vector<3x1xf32> to vector<1x3x1xf32>
    %53 = vector.broadcast %52 : vector<1x3x1xf32> to vector<1x3x128xf32>
    %54 = arith.addf %49, %53 : vector<1x3x128xf32>
    %55 = arith.subf %41, %0 : vector<1x3x128xf32>
    %56 = vector.extract_strided_slice %42 {offsets = [2, 0, 0], sizes = [1, 3, 1], strides = [1, 1, 1]} : vector<3x3x1xf32> to vector<1x3x1xf32>
    %57 = vector.shape_cast %56 : vector<1x3x1xf32> to vector<3x1xf32>
    %58 = vector.shape_cast %57 : vector<3x1xf32> to vector<1x3x1xf32>
    %59 = vector.broadcast %58 : vector<1x3x1xf32> to vector<1x3x128xf32>
    %60 = arith.addf %55, %59 : vector<1x3x128xf32>
    %c0_17 = arith.constant 0 : index
    %c0_18 = arith.constant 0 : index
    %c0_19 = arith.constant 0 : index
    %61 = vector.load %arg5[%c0_17, %c0_18, %c0_19] : memref<1x9x128xf32, #tpu.memory_space<vmem>>, vector<1x3x128xf32>
    tpu.vector_store %arg5[%c0_17, %c0_18, %c0_19], %48 {strides = array<i32>} : memref<1x9x128xf32, #tpu.memory_space<vmem>>, vector<1x3x128xf32>,
    %c0_20 = arith.constant 0 : index
    %c3 = arith.constant 3 : index
    %c0_21 = arith.constant 0 : index
    %62 = vector.load %arg5[%c0_20, %c3, %c0_21] : memref<1x9x128xf32, #tpu.memory_space<vmem>>, vector<1x3x128xf32>
    tpu.vector_store %arg5[%c0_20, %c3, %c0_21], %54 {strides = array<i32>} : memref<1x9x128xf32, #tpu.memory_space<vmem>>, vector<1x3x128xf32>,
    %c0_22 = arith.constant 0 : index
    %c6 = arith.constant 6 : index
    %c0_23 = arith.constant 0 : index
    %63 = vector.load %arg5[%c0_22, %c6, %c0_23] : memref<1x9x128xf32, #tpu.memory_space<vmem>>, vector<1x3x128xf32>
    tpu.vector_store %arg5[%c0_22, %c6, %c0_23], %60 {strides = array<i32>} : memref<1x9x128xf32, #tpu.memory_space<vmem>>, vector<1x3x128xf32>,
    return
  }
  func.func @transform_0(%arg0: i32, %arg1: i32) -> (i32, i32, i32) {
    %c0_i32 = arith.constant 0 : i32
    %c0_i32_0 = arith.constant 0 : i32
    %c0_i32_1 = arith.constant 0 : i32
    %c0_i32_2 = arith.constant 0 : i32
    return %c0_i32, %c0_i32_0, %c0_i32_1 : i32, i32, i32
  }
  func.func @transform_1(%arg0: i32, %arg1: i32) -> (i32, i32, i32) {
    %c0_i32 = arith.constant 0 : i32
    %c0_i32_0 = arith.constant 0 : i32
    return %arg0, %c0_i32, %arg1 : i32, i32, i32
  }
  func.func @transform_2(%arg0: i32, %arg1: i32) -> (i32, i32, i32, i32) {
    %c1_i32 = arith.constant 1 : i32
    %0 = arith.addi %arg1, %c1_i32 : i32
    %c1_i32_0 = arith.constant 1 : i32
    %1 = arith.muli %0, %c1_i32_0 : i32
    %c1_i32_1 = arith.constant 1 : i32
    %2 = arith.minsi %1, %c1_i32_1 : i32
    %c0_i32 = arith.constant 0 : i32
    %c0_i32_2 = arith.constant 0 : i32
    %c0_i32_3 = arith.constant 0 : i32
    return %arg0, %c0_i32, %2, %c0_i32_2 : i32, i32, i32, i32
  }
  func.func @transform_3(%arg0: i32, %arg1: i32) -> (i32, i32, i32) {
    %c0_i32 = arith.constant 0 : i32
    %c0_i32_0 = arith.constant 0 : i32
    return %arg0, %c0_i32, %arg1 : i32, i32, i32
  }
}

</mosaic_0001>

<bundles_post_ra>
// kernel: tpu_custom_call.1
= control target key start
LH: loop header
LB: loop body
LE: loop exit
PB: predicated region body
PF: predicated region fallthrough
CT: control target
= control target key end

     0   :  { %s929_s0 = inlined_call_operand.vmem [shape: f32[3,3,1], index: 0, kind: input, shape index: {}]   ;;  %s930_s1 = inlined_call_operand.vmem [shape: f32[2,3,256], index: 1, kind: input, shape index: {}]   ;;  %s931_s2 = inlined_call_operand.hbm [shape: f32[2,3,16,16], index: 2, kind: input, shape index: {}]   ;;  %s932_s3 = inlined_call_operand.vmem [shape: f32[2,9,256], index: 3, kind: output, shape index: {}]  }
   0x1   :  { %933 = sst [smem:[#allocation6_spill]] %s931_s2 }
   0x2   :  { %8 = vsyncpa [#allocation3], 0 }
   0x3   :  { %10 = vsyncpa [#allocation3 + $0x1], 0  ;;  %s729_s12 = smov 0   ;;  %s731_s13 = smov 0  }
   0x4   :  { %s733_s14 = smov 0   ;;  %s735_s15 = smov 0  }
   0x5   :  { %s737_s16 = smov 0   ;;  %s739_s17 = smov 0  }
   0x6   :  { %s741_s18 = smov 0   ;;  %s743_s19 = smov 0  }
   0x7   :  { %s745_s20 = smov 0   ;;  %s747_s21 = smov 0  }
   0x8 LB: > { %s473_s22 = sadd.s32 4294967295, %s700_s21   ;;  %s25_s23 = sadd.s32 1, %s692_s19  ;;  %s700_s21 = sphi %s747_s21, %s16_s21   ;;  %s696_s20 = sphi %s745_s20, %s950_s20   ;;  %s692_s19 = sphi %s743_s19, %s949_s19   ;;  %s688_s18 = sphi %s741_s18, %s948_s18   ;;  %s684_s17 = sphi %s739_s17, %s947_s17   ;;  %s680_s16 = sphi %s737_s16, %s946_s16   ;;  %s676_s15 = sphi %s735_s15, %s945_s15   ;;  %s672_s14 = sphi %s733_s14, %s944_s14   ;;  %s668_s13 = sphi %s731_s13, %s943_s13   ;;  %s664_s12 = sphi %s729_s12, %s942_s12  }
   0x9   : > { %p26_p0 = scmp.ge.s32.totalorder %s25_s23, 2  ;;  %s28_s24 = sadd.s32 1, %s696_s20 }
   0xa   : > { %s92_s25 = sadd.s32 1, %s680_s16  ;;  %p99_p2 = scmp.ne.s32.totalorder %s680_s16, %s676_s15 }
   0xb   : > { %s952_s23 = smov (%p26_p0, %s25_s23), 0  ;;  %s954_s24 = smov (!%p26_p0, %s28_s24), %s696_s20 }
   0xc   : > { %p30_p1 = scmp.ge.s32.totalorder %s954_s24, 2  ;;  %p100_p3 = scmp.eq.s32.totalorder %s700_s21, 0 }
   0xd   : > { %p105_p4 = scmp.ne.s32.totalorder %s676_s15, %s672_s14  ;;  %p106_p7 = scmp.eq.s32.totalorder %s473_s22, 0 }
   0xe   : > { %s956_s24 = smov (%p30_p1, %s954_s24), 0  ;;  %p792_p5 = por %p100_p3, %p99_p2 }
   0xf   : > { %s87_s26 = ssub.s32 %s696_s20, %s956_s24  ;;  %s116_s28 = ssub.s32 %s692_s19, %s952_s23 }
  0x10   : > { %p90_p6 = scmp.eq.s32.totalorder %s87_s26, 0  ;;  %s120_s29 = sadd.s32 1, %s668_s13 }
  0x11   : > { %p802_p8 = por %p106_p7, %p105_p4  ;;  %s117_s5 = sor.u32 %s116_s28, %s87_s26 }
  0x12   : > { %s800_s30 = scalar_select %p90_p6, %s680_s16, %s92_s25  }
  0x13   : > { %p118_p9 = scmp.eq.s32.totalorder %s117_s5, 0  ;;  %p130_p10 = scmp.ne.s32.totalorder %s668_s13, %s664_s12 }
  0x14   : > { %p131_p11 = scmp.eq.s32.totalorder %s473_s22, 3  ;;  %p496_p13 = scmp.lt.s32.totalorder %s700_s21, 4 }
  0x15   : > { %s809_s6 = scalar_select %p118_p9, %s668_s13, %s120_s29  }
  0x16   : > { %p811_p12 = por %p131_p11, %p130_p10  ;;  %s171_s8 = sand.u32 1, %s680_s16  }
  0x17   : > { %s487_s9 = smul.u32 24, %s171_s8  ;;  %p819_p0 = pnand %p496_p13, %p792_p5 }
  0x18   : > { %s936_s7 = scalar_select %p811_p12, 1, 0 }
  0x19   : > { %s661_s11 = smul.u32 768, %s696_s20  ;;  %s938_s2 = sld [smem:[#allocation6_spill]] }
  0x1a   : > { %s175_s28 = scalar_lea.vmem [#allocation2], %s487_s9  ;;  %s832_s27 = scalar_lea.sflag [#allocation3], %s171_s8 }
  0x1b   : > { %s660_s14 = sadd.s32 128, %s661_s11  ;;  %s186_s29 = sshll.u32 %s175_s28, 4  ;;  %s829_s29 = int_to_ptr.vmem [resolvable:$true] %s186_s29 }
  0x1c   : > { %p587_p3 = pneg %p819_p0 }
  0x1f   : > { %s827_s26 = scalar_lea.hbm %s938_s2, %s660_s14  ;;  %s590_s25 = scalar_lea.hbm %s938_s2, 1536 }
  0x20   : > { %s585_s5 = scalar_lea.hbm %s827_s26, 384  ;;  %p591_p6 = scmp.lt.u32.totalorder %s827_s26, %s938_s2 }
  0x21   : > { %p586_p2 = scmp.ne.s32.totalorder %s827_s26, %s585_s5  ;;  %p592_p7 = scmp.lt.u32.totalorder %s590_s25, %s585_s5 }
  0x22   : > { %p594_p10 = scmp.lt.u32.totalorder %s585_s5, %s827_s26 }
  0x23   : > { %p588_p4 = pnand %p587_p3, %p586_p2  ;;  %p593_p9 = por %p592_p7, %p591_p6 }
  0x25   : > { %p589_p5 = pneg %p588_p4  ;;  %p595_p11 = por %p594_p10, %p593_p9 }
  0x27   : > { %p596_p13 = pnand %p595_p11, %p589_p5 }
  0x29   : > { %599 = shalt.err (!%p596_p13)
}
  0x2a   : > { %s600_s8 = scalar_lea.vmem %s829_s29, 384  ;;  %s702_s28 = smov [#allocation2]  }
  0x2b   : > { %p601_p2 = scmp.ne.s32.totalorder %s829_s29, %s600_s8  ;;  %s605_s11 = sshll.u32 %s702_s28, 4  ;;  %s606_s11 = int_to_ptr.vmem [resolvable:$false] %s605_s11 }
  0x2c   : > { %s607_s14 = scalar_lea.vmem %s606_s11, 768  ;;  %p608_p12 = scmp.lt.s32.totalorder %s829_s29, %s606_s11 }
  0x2d   : > { %p603_p4 = pnand %p601_p2, %p587_p3  ;;  %p609_p6 = scmp.lt.s32.totalorder %s607_s14, %s600_s8 }
  0x2f   : > { %p604_p1 = pneg %p603_p4  ;;  %p610_p7 = por %p609_p6, %p608_p12 }
  0x31   : > { %p611_p9 = pnand %p610_p7, %p604_p1 }
  0x33   : > { %614 = shalt.err (!%p611_p9)
}
  0x34   : > { %s703_s5 = smov 256   ;;  %s704_s25 = smov 128  }
  0x35   : > { %s705_s22 = smov 8   ;;  %p194_p3 = scmp.lt.s32.totalorder %s700_s21, 5 }
  0x36   : > { %495 = dma.hbm_to_vmem [thread:$0]  (!%p819_p0), %s827_s26, 384, %s829_s29, %s832_s27, %s703_s5, %s704_s25, %s705_s22  }
  0x37   : > { %p939_p5 = scmp.ge.s32.totalorder %s700_s21, 1 }
  0x39   : > { %p195_p10 = pnand %p939_p5, %p194_p3 }
  0x3a   : > { %s200_s9 = sand.u32 (!%p195_p10), 1, %s676_s15  }
  0x3b   : > { %198 = sbr.rel (%p195_p10) target bundleno = 330 (0x14a), region = 32  ;;  %s201_s28 = scalar_lea.sflag (!%p195_p10), [#allocation3], %s200_s9 }
  0x3c   : > { %s489_s8 = smul.u32 (!%p195_p10), 24, %s200_s9 }
  0x3e   : > { %s204_s11 = scalar_lea.vmem (!%p195_p10), [#allocation2], %s489_s8 }
  0x42   : > { %656 = dma.done.wait (%p802_p8), %s201_s28, 384  }
  0x43   : > { %658 = vsyncadd (%p802_p8), %s201_s28, 4294966912  ;;  %p234_p12 = scmp.lt.s32.totalorder %s688_s18, 1  ;;  %p236_p0 = scmp.lt.s32.totalorder %s684_s17, 1  ;;  %v706_v0 = vmov 0   ;;  %v304_v1 = vld [vmem:[%s929_s0] sm:$0x7]  ;;  %v275_v17 = vlaneseq }
  0x44   : > { %583 = vset.pattern.permute.xlu1 %v706_v0  ;;  %s246_s10 = sadd.s32 1, %s684_s17  ;;  %584 = vset.pattern.permute.xlu0 %v706_v0  ;;  %v248_v3 = vld [vmem:[%s204_s11] sm:$0x1]  ;;  %v249_v4 = vld [vmem:[%s204_s11 + $0x8] sm:$0x1]  ;;  %vm265_vm1 = vcmask 1041409  }
  0x45   : > { %s235_s26 = scalar_select %p234_p12, %s688_s18, 1  ;;  %310 = vperm.xlu1 %583, %v304_v1   ;;  %v250_v5 = vld [vmem:[%s204_s11 + $0x10] sm:$0x1]  ;;  %v305_v6 = vld [vmem:[%s929_s0 + $0x4] sm:$0x7]  ;;  %vm268_vm2 = vcmask 1042434  }
  0x46   : > { %s237_s29 = scalar_select %p236_p0, %s684_s17, 1  ;;  %v306_v15 = vld [vmem:[%s929_s0 + $0x8] sm:$0x7]  ;;  %vm273_vm3 = vcmask 916480   ;;  %v276_v21 = vand.u32 127, %v275_v17  ;;  %vm293_vm4 = vcmask 1039360  }
  0x47   : > { %s480_s27 = sshll.u32 %s235_s26, 1  ;;  %p873_p1 = scmp.lt.s32.totalorder %s246_s10, 2 }
  0x48   : > { %s239_s4 = sadd.s32 %s480_s27, %s237_s29  ;;  %s707_s10 = smov 112   ;;  %v281_v24 = vand.u32 15, %v276_v21 }
  0x49   : > { %s481_s5 = sshll.u32 %s239_s4, 2  ;;  %317 = vperm.xlu1 %583, %v305_v6   ;;  %s708_s27 = smov 127  }
  0x4a   : > { %s241_s28 = scalar_lea.vmem %s930_s1, %s481_s5  ;;  %s231_s2 = sand.u32 1, %s664_s12   ;;  %vm289_vm5 = vcmp.lt.s32.totalorder %v281_v24, 15 }
  0x4b   : > { %v245_v2 = vld [vmem:[%s241_s28] sm:$0x7]  ;;  %s251_s26 = scalar_select %p873_p1, 1, 0 }
  0x4c   : > { %258 = vrot.lane.b32.xlu0 %v245_v2, %s707_s10  ;;  %s479_s4 = sshll.u32 %s231_s2, 4  ;;  %p941_p8 = scmp.ne.s32.totalorder %s936_s7, 0 }
  0x4d   : > { %v252_v7 = vstv %s251_s26  ;;  %290 = vrot.lane.b32.xlu1 %v245_v2, %s708_s27  ;;  %s233_s5 = scalar_lea.vmem [#allocation4], %s479_s4  ;;  %s483_s12 = sshll.u32 (%p941_p8), %s688_s18, 2 }
  0x4e   : > { %vm253_vm0 = vcmp.eq.s32.totalorder %v252_v7, 1  ;;  %s339_s25 = sadd.s32 (%p941_p8), %s684_s17, %s483_s12 }
  0x4f   : > { %v254_v8 = vsel %vm253_vm0, %v248_v3, 0.0  ;;  %v255_v9 = vsel %vm253_vm0, %v249_v4, 0.0  ;;  %v256_v10 = vsel %vm253_vm0, %v250_v5, 0.0  ;;  %s484_s22 = sshll.u32 (%p941_p8), %s339_s25, 3 }
  0x50   : > { %v264_v11 = vrot.slane %v255_v9, 7  ;;  %v267_v12 = vrot.slane %v256_v10, 6  ;;  %s341_s28 = scalar_lea.vmem (%p941_p8), %s932_s3, %s484_s22 }
  0x52   : > { %v266_v13 = vsel %vm265_vm1, %v264_v11, %v254_v8 }
  0x53   : > { %v269_v14 = vsel %vm268_vm2, %v267_v12, %v266_v13 }
  0x54   : > { %270 = vrot.lane.b32.xlu0 %v269_v14, %s707_s10 }
  0x58   : > { %324 = vperm.xlu0 %584, %v306_v15  }
  0xbe   : > { %v259_v16 = vpop.permute.xlu0 %258 }
  0xc4   : > { %v311_v22 = vpop.permute.xlu1 %310 }
  0xc6   : > { %v271_v18 = vpop.permute.xlu0 %270 }
  0xc7   : > { %v274_v19 = vsel %vm273_vm3, %v259_v16, %v271_v18 }
  0xc8   : > { %299 = vrot.lane.b32.xlu1 %v274_v19, %s708_s27  ;;  %v307_v20 = vsub.f32 %v274_v19, %v245_v2  ;;  %v318_v25 = vpop.permute.xlu1 %317 }
  0xca   : > { %v313_v23 = vadd.f32 %v311_v22, %v307_v20 }
  0xcc   : > { %328 = vst [vmem:[%s233_s5] sm:$0x7] %v313_v23  ;;  %v291_v26 = vpop.permute.xlu1 %290 }
  0xcd   : > { %v294_v27 = vsel %vm293_vm4, %v291_v26, 0.0 }
  0xce   : > { %v297_v28 = vsel %vm289_vm5, %v294_v27, 0.0 }
  0xcf   : > { %v314_v29 = vsub.f32 %v297_v28, %v245_v2 }
  0xd1   : > { %v320_v30 = vadd.f32 %v318_v25, %v314_v29 }
  0xd3   : > { %329 = vst [vmem:[%s233_s5 + $0x3] sm:$0x7] %v320_v30 }
  0xd7   : > { %v325_v34 = vpop.permute.xlu0 %324 }
 0x13a   : > { %v300_v31 = vpop.permute.xlu1 %299 }
 0x13b   : > { %v302_v32 = vsel %vm293_vm4, %v300_v31, 0.0  ;;  %337 = sbr.rel (!%p941_p8) target bundleno = 330 (0x14a), region = 40 }
 0x13c   : > { %v303_v33 = vsel %vm289_vm5, %v302_v32, 0.0 }
 0x13d   : > { %v321_v35 = vsub.f32 %v303_v33, %v245_v2 }
 0x13f   : > { %v327_v36 = vadd.f32 %v325_v34, %v321_v35 }
 0x141   : > { %330 = vst [vmem:[%s233_s5 + $0x6] sm:$0x7] %v327_v36 }
 0x148   : > { %v371_v37 = vld [vmem:[%s233_s5] sm:$0xff]  ;;  %v373_v38 = vld [vmem:[%s233_s5 + $0x8] sm:$0xff] }
 0x149   : > { %372 = vst [vmem:[%s341_s28] sm:$0xff] %v371_v37  ;;  %374 = vst [vmem:[%s341_s28 + $0x10] sm:$0xff] %v373_v38 }
 0x14a PF: > { %s16_s21 = sadd.s32 1, %s700_s21   ;;  %s942_s12 = smov %s668_s13 }
 0x14b   : > { %p13_p11 = scmp.ge.s32.totalorder %s16_s21, 6   ;;  %s943_s13 = smov %s809_s6 }
 0x14c   : > { %s944_s14 = smov %s676_s15  ;;  %s945_s15 = smov %s680_s16 }
 0x14d   : > { %s946_s16 = smov %s800_s30  ;;  %s947_s17 = smov %s692_s19 }
 0x14e   : > { %s948_s18 = smov %s696_s20  ;;  %s949_s19 = smov %s952_s23 }
 0x14f   : > { %s950_s20 = smov %s956_s24  ;;  %15 = sbr.rel (!%p13_p11) target bundleno = 8 (0x8), region = 113 }
 0x156   :  { %390 = vsyncpa [#allocation3], 1 }
 0x157   :  { %392 = vsyncpa [#allocation3 + $0x1], 1 }

</bundles_post_ra>
